<compile_context>
chip_gen: v7x
topology: tpu7x:2x2x1
jax: 0.10.0
libtpu: 0.0.40
codegen_flags: <defaults>
</compile_context>

<pallas_src>
import functools

import jax
import jax.numpy as jnp
from jax.experimental import pallas as pl
from jax.experimental.pallas import tpu as pltpu

BN_EPS = 1e-5


def _round_up(x, m):
    return (x + m - 1) // m * m


def _cdiv(a, b):
    return -(-a // b)


def _pct_kernel(f_ref, w1m_ref, w1s_ref, b1_ref, w2_ref, b2_ref, w3_ref, b3_ref,
                out_ref, max_sc, sum_sc, *, tile_n, n_valid, mask_last, groups, d_in):
    n = pl.program_id(1)
    last = pl.num_programs(1) - 1

    @pl.when(n == 0)
    def _():
        max_sc[...] = jnp.full_like(max_sc, -jnp.inf)
        sum_sc[...] = jnp.zeros_like(sum_sc)

    def _accumulate(f_max, f_sum):
        # Reductions on the native (bf16/f32) tile dtype; only the (tB, Dp)
        # results are promoted to f32 — no full-tile f32 temporaries.
        max_sc[...] = jnp.maximum(max_sc[...],
                                  jnp.max(f_max, axis=1).astype(jnp.float32))
        sum_sc[...] = sum_sc[...] + jnp.sum(f_sum, axis=1, dtype=jnp.float32)

    if mask_last:
        # Masking is gated to the final (ragged) points tile only.
        @pl.when(n != last)
        def _():
            f = f_ref[...]
            _accumulate(f, f)

        @pl.when(n == last)
        def _():
            f = f_ref[...]
            loc = jax.lax.broadcasted_iota(jnp.int32, f.shape, 1)
            valid = (n * tile_n + loc) < n_valid
            # OOB contents of a ragged block are unspecified -> mask max AND sum.
            _accumulate(jnp.where(valid, f, -jnp.inf), jnp.where(valid, f, 0.0))
    else:
        f = f_ref[...]
        _accumulate(f, f)

    @pl.when(n == last)
    def _():
        # Combine the lane groups of the running max (lane-densified stream).
        m = max_sc[...]                                   # (tB, groups*D)
        mp = m[:, :d_in]
        for g in range(1, groups):
            mp = jnp.maximum(mp, m[:, g * d_in:(g + 1) * d_in])
        # cat([max, mean]) @ W1  ==  max @ W1_max + sum @ (tile_k(W1_mean)/N)
        h = (jnp.dot(mp, w1m_ref[...], preferred_element_type=jnp.float32)
             + jnp.dot(sum_sc[...], w1s_ref[...], preferred_element_type=jnp.float32)
             + b1_ref[...])
        h = jnp.maximum(h, 0.0)          # BN folded into W/b; Dropout = id (eval)
        h = jnp.dot(h, w2_ref[...], preferred_element_type=jnp.float32) + b2_ref[...]
        h = jnp.maximum(h, 0.0)
        out_ref[...] = (jnp.dot(h, w3_ref[...], preferred_element_type=jnp.float32)
                        + b3_ref[...]).astype(out_ref.dtype)


def _fold_params(p, n_points, groups):
    """Fold eval-mode BatchNorm into the Linears, split W1 into max/mean halves,
    fold 1/N into the mean half (replicated per lane group), pad classes to 128."""
    num_classes = p["w3"].shape[1]
    d = p["w1"].shape[0] // 2

    s1 = p["g1"] * jax.lax.rsqrt(p["rv1"] + BN_EPS)          # (1, H)
    w1 = p["w1"] * s1
    b1 = (p["b1"] - p["rm1"]) * s1 + p["be1"]
    w1_max = w1[:d]                                          # (D, H)
    w1_mean = w1[d:] * (1.0 / n_points)                      # mean = sum/N folded
    w1_sum = jnp.concatenate([w1_mean] * groups, axis=0)     # (groups*D, H)

    s2 = p["g2"] * jax.lax.rsqrt(p["rv2"] + BN_EPS)
    w2 = p["w2"] * s2
    b2 = (p["b2"] - p["rm2"]) * s2 + p["be2"]

    c_pad = _round_up(num_classes, 128)
    w3 = jnp.pad(p["w3"], ((0, 0), (0, c_pad - num_classes)))
    b3 = jnp.pad(p["b3"], ((0, 0), (0, c_pad - num_classes)))
    return w1_max, w1_sum, b1, w2, b2, w3, b3


def pct_classifier_forward(f_in, params, *, stream_dtype=jnp.bfloat16,
                           points_per_tile=None, tile_bytes_target=None):
    B, N, D = f_in.shape
    H = params["w2"].shape[0]
    num_classes = params["w3"].shape[1]

    # bf16 streaming halves HBM bytes of the dominant stream (accumulation is f32).
    # Callers that already hold bf16 activations avoid this one-off cast entirely.
    if stream_dtype is not None and f_in.dtype != stream_dtype:
        f_in = f_in.astype(stream_dtype)
    itemsize = jnp.dtype(f_in.dtype).itemsize
    sub_mult = 16 if itemsize == 2 else 8                    # bf16 sublane packing

    # Lane-densify D < 128 streams: (B, N, D) -> (B, N//k, k*D). Row-major
    # contiguous reshape => free; each vreg now carries k points (lane-dense VPU).
    groups = 1
    if D < 128:
        groups = max(1, 128 // D)
        while groups > 1 and (N % groups) != 0:
            groups -= 1
    Dp = groups * D
    Np = N // groups
    if groups > 1:
        f_in = f_in.reshape(B, Np, Dp)

    w1_max, w1_sum, b1, w2, b2, w3, b3 = _fold_params(params, N, groups)
    c_pad = w3.shape[1]

    # ---- Tiling (no host-side padding of f_in) ------------------------------
    if B <= 8:
        tB = B                                               # tiny batch: one tile
    else:
        # >= 2 batch tiles so both v7x TensorCores get work on the parallel axis.
        tB = min(128, _round_up(_cdiv(B, 2), 8))
    grid_b = _cdiv(B, tB)

    try:
        vmem_cap = int(pltpu.get_tpu_info().vmem_capacity_bytes)
    except Exception:
        vmem_cap = 64 << 20                                  # v7x per-core (smallest)
    if tile_bytes_target is None:
        tile_bytes_target = vmem_cap // 8                    # 16 MiB v5e/v6e, 8 MiB v7x

    if points_per_tile is not None:
        tN = max(sub_mult, points_per_tile // sub_mult * sub_mult)
    else:
        row_bytes = max(tB * Dp * itemsize, 1)
        tN = max(sub_mult, (tile_bytes_target // row_bytes) // sub_mult * sub_mult)
    if tN >= Np:
        tN = Np                                              # full extent: always legal
    grid_n = _cdiv(Np, tN)
    mask_last = (Np % tN) != 0

    kernel = functools.partial(_pct_kernel, tile_n=tN, n_valid=Np,
                               mask_last=mask_last, groups=groups, d_in=D)

    const = lambda b, n: (0, 0)
    in_specs = [
        pl.BlockSpec((tB, tN, Dp), lambda b, n: (b, n, 0)),  # streamed point blocks
        pl.BlockSpec(w1_max.shape, const),                   # weights: constant index
        pl.BlockSpec(w1_sum.shape, const),                   #   -> DMA'd once,
        pl.BlockSpec(b1.shape, const),                       #      VMEM-resident
        pl.BlockSpec(w2.shape, const),
        pl.BlockSpec(b2.shape, const),
        pl.BlockSpec(w3.shape, const),
        pl.BlockSpec(b3.shape, const),
    ]
    out_spec = pl.BlockSpec((tB, c_pad), lambda b, n: (b, 0))

    # ---- VMEM budget (2x for double-buffered blocks, weights included) ------
    f_tile_bytes = tB * tN * Dp * itemsize
    weight_bytes = sum(int(a.size) * jnp.dtype(a.dtype).itemsize
                       for a in (w1_max, w1_sum, b1, w2, b2, w3, b3))
    vmem_limit = int(2 * f_tile_bytes + 2 * weight_bytes
                     + 2 * tB * Dp * 4 + 2 * tB * c_pad * 4 + (4 << 20))
    vmem_limit = min(max(vmem_limit, 16 << 20), int(vmem_cap * 0.9))

    flops = 2 * B * (D * H + Dp * H + H * H + H * c_pad) + 2 * B * N * D
    bytes_accessed = B * N * D * itemsize + weight_bytes + B * c_pad * 4

    out = pl.pallas_call(
        kernel,
        out_shape=jax.ShapeDtypeStruct((B, c_pad), jnp.float32),
        grid=(grid_b, grid_n),
        in_specs=in_specs,
        out_specs=out_spec,
        scratch_shapes=[pltpu.VMEM((tB, Dp), jnp.float32),   # running max
                        pltpu.VMEM((tB, Dp), jnp.float32)],  # running sum (f32)
        compiler_params=pltpu.CompilerParams(
            dimension_semantics=("parallel", "arbitrary"),
            vmem_limit_bytes=vmem_limit),
        cost_estimate=pl.CostEstimate(flops=flops, transcendentals=0,
                                      bytes_accessed=bytes_accessed),
    )(f_in, w1_max, w1_sum, b1, w2, b2, w3, b3)

    return out[:, :num_classes]


def init_params(key, input_dim, hidden_dim, num_classes):
    """Linear: PyTorch-style U(-k, k); BN params/stats randomized a bit so the
    eval-mode BatchNorm folding is actually exercised."""
    ks = jax.random.split(key, 14)

    def linear(kw, kb, fan_in, fan_out):
        k = 1.0 / jnp.sqrt(fan_in)
        w = jax.random.uniform(kw, (fan_in, fan_out), jnp.float32, -k, k)  # (in, out) = W.T
        b = jax.random.uniform(kb, (1, fan_out), jnp.float32, -k, k)
        return w, b

    w1, b1 = linear(ks[0], ks[1], 2 * input_dim, hidden_dim)
    w2, b2 = linear(ks[2], ks[3], hidden_dim, hidden_dim)
    w3, b3 = linear(ks[4], ks[5], hidden_dim, num_classes)

    def bn(kg, kbe, km, kv, n):
        g = 1.0 + 0.1 * jax.random.normal(kg, (1, n), jnp.float32)
        be = 0.1 * jax.random.normal(kbe, (1, n), jnp.float32)
        rm = 0.1 * jax.random.normal(km, (1, n), jnp.float32)
        rv = 1.0 + jnp.abs(0.1 * jax.random.normal(kv, (1, n), jnp.float32))
        return g, be, rm, rv

    g1, be1, rm1, rv1 = bn(ks[6], ks[7], ks[8], ks[9], hidden_dim)
    g2, be2, rm2, rv2 = bn(ks[10], ks[11], ks[12], ks[13], hidden_dim)

    return {"w1": w1, "b1": b1, "g1": g1, "be1": be1, "rm1": rm1, "rv1": rv1,
            "w2": w2, "b2": b2, "g2": g2, "be2": be2, "rm2": rm2, "rv2": rv2,
            "w3": w3, "b3": b3}


def _reference_forward(f_in, p):
    max_pool = jnp.max(f_in, axis=1)
    av_pool = jnp.mean(f_in, axis=1)
    c = jnp.concatenate([max_pool, av_pool], axis=1)
    h = c @ p["w1"] + p["b1"]
    h = (h - p["rm1"]) * jax.lax.rsqrt(p["rv1"] + BN_EPS) * p["g1"] + p["be1"]
    h = jnp.maximum(h, 0.0)
    h = h @ p["w2"] + p["b2"]
    h = (h - p["rm2"]) * jax.lax.rsqrt(p["rv2"] + BN_EPS) * p["g2"] + p["be2"]
    h = jnp.maximum(h, 0.0)
    return h @ p["w3"] + p["b3"]


if __name__ == "__main__":
    key = jax.random.PRNGKey(0)
    k_x1, k_p1, k_x2, k_p2, k_x3, k_p3 = jax.random.split(key, 6)

    # Case 1: tiny paper-style layout, exact f32 stream, single-tile reduction,
    # lane-densified D=32 (k=4) stream.
    B, N, D, H, C = 2, 8, 32, 32, 10
    f1 = jax.random.normal(k_x1, (B, N, D), jnp.float32)
    p1 = init_params(k_p1, D, H, C)
    o1 = jax.block_until_ready(
        pct_classifier_forward(f1, p1, stream_dtype=jnp.float32))
    assert o1.shape == (B, C), o1.shape
    r1 = _reference_forward(f1, p1)
    assert jnp.allclose(o1, r1, atol=1e-3, rtol=1e-3), "mismatch vs reference (case 1)"

    # Case 2: multi-tile reduction with a ragged final points tile (masked max AND
    # sum), f32 stream, D=64 lane-densified (k=2).
    B2, N2, D2, H2, C2 = 4, 100, 64, 64, 10
    f2 = jax.random.normal(k_x2, (B2, N2, D2), jnp.float32)
    p2 = init_params(k_p2, D2, H2, C2)
    o2 = jax.block_until_ready(
        pct_classifier_forward(f2, p2, stream_dtype=jnp.float32, points_per_tile=16))
    assert o2.shape == (B2, C2), o2.shape
    r2 = _reference_forward(f2, p2)
    assert jnp.allclose(o2, r2, atol=1e-3, rtol=1e-3), "mismatch vs reference (case 2)"

    # Case 3: default bf16 stream, two batch tiles with a ragged last batch block
    # (B=12 -> tB=8), lane-densified D=32, ragged points tile.
    B3, N3, D3, H3, C3 = 12, 100, 32, 64, 10
    f3 = jax.random.normal(k_x3, (B3, N3, D3), jnp.float32)
    p3 = init_params(k_p3, D3, H3, C3)
    o3 = jax.block_until_ready(
        pct_classifier_forward(f3, p3, points_per_tile=16))
    assert o3.shape == (B3, C3), o3.shape
    r3 = _reference_forward(f3, p3)
    assert jnp.allclose(o3, r3, atol=6e-2, rtol=6e-2), "mismatch vs reference (case 3, bf16)"

    print("KERNEL_OK")
</pallas_src>

<mosaic_0001>
module attributes {stable_mosaic.version = 11 : i64} {
  func.func @_pct_kernel(%arg0: i32, %arg1: i32, %arg2: memref<2x2x128xf32, #tpu.memory_space<vmem>>, %arg3: memref<32x32xf32, #tpu.memory_space<vmem>>, %arg4: memref<128x32xf32, #tpu.memory_space<vmem>>, %arg5: memref<1x32xf32, #tpu.memory_space<vmem>>, %arg6: memref<32x32xf32, #tpu.memory_space<vmem>>, %arg7: memref<1x32xf32, #tpu.memory_space<vmem>>, %arg8: memref<32x128xf32, #tpu.memory_space<vmem>>, %arg9: memref<1x128xf32, #tpu.memory_space<vmem>>, %arg10: memref<2x128xf32, #tpu.memory_space<vmem>>, %arg11: memref<2x128xf32, #tpu.memory_space<vmem>>, %arg12: memref<2x128xf32, #tpu.memory_space<vmem>>) attributes {dimension_semantics = [#tpu.dimension_semantics<parallel>, #tpu.dimension_semantics<arbitrary>], iteration_bounds = array<i64: 1, 1>, scalar_prefetch = 0 : i64, scratch_operands = 2 : i64, tpu.core_type = #tpu.core_type<tc>, window_params = [{transform_indices = @transform_0, window_bounds = array<i64: 2, 2, 128>}, {pipeline_mode = #tpu.pipeline_mode<synchronous>, transform_indices = @transform_1, window_bounds = array<i64: 32, 32>}, {pipeline_mode = #tpu.pipeline_mode<synchronous>, transform_indices = @transform_2, window_bounds = array<i64: 128, 32>}, {pipeline_mode = #tpu.pipeline_mode<synchronous>, transform_indices = @transform_3, window_bounds = array<i64: 1, 32>}, {pipeline_mode = #tpu.pipeline_mode<synchronous>, transform_indices = @transform_4, window_bounds = array<i64: 32, 32>}, {pipeline_mode = #tpu.pipeline_mode<synchronous>, transform_indices = @transform_5, window_bounds = array<i64: 1, 32>}, {pipeline_mode = #tpu.pipeline_mode<synchronous>, transform_indices = @transform_6, window_bounds = array<i64: 32, 128>}, {pipeline_mode = #tpu.pipeline_mode<synchronous>, transform_indices = @transform_7, window_bounds = array<i64: 1, 128>}, {transform_indices = @transform_8, window_bounds = array<i64: 2, 128>}]} {
    %c0_i32 = arith.constant 0 : i32
    %0 = arith.cmpi eq, %arg1, %c0_i32 : i32
    %1 = arith.extui %0 : i1 to i32
    %c0_i32_0 = arith.constant 0 : i32
    %2 = arith.cmpi ne, %1, %c0_i32_0 : i32
    scf.if %2 {
      %cst_14 = arith.constant 0xFF800000 : f32
      %15 = vector.broadcast %cst_14 : f32 to vector<2x128xf32>
      %c0_15 = arith.constant 0 : index
      %c0_16 = arith.constant 0 : index
      %16 = vector.load %arg11[%c0_15, %c0_16] : memref<2x128xf32, #tpu.memory_space<vmem>>, vector<2x128xf32>
      tpu.vector_store %arg11[%c0_15, %c0_16], %15 {strides = array<i32>} : memref<2x128xf32, #tpu.memory_space<vmem>>, vector<2x128xf32>,
      %cst_17 = arith.constant 0.000000e+00 : f32
      %17 = vector.broadcast %cst_17 : f32 to vector<2x128xf32>
      %c0_18 = arith.constant 0 : index
      %c0_19 = arith.constant 0 : index
      %18 = vector.load %arg12[%c0_18, %c0_19] : memref<2x128xf32, #tpu.memory_space<vmem>>, vector<2x128xf32>
      tpu.vector_store %arg12[%c0_18, %c0_19], %17 {strides = array<i32>} : memref<2x128xf32, #tpu.memory_space<vmem>>, vector<2x128xf32>,
    } else {
    }
    %c0 = arith.constant 0 : index
    %c0_1 = arith.constant 0 : index
    %c0_2 = arith.constant 0 : index
    %3 = vector.load %arg2[%c0, %c0_1, %c0_2] : memref<2x2x128xf32, #tpu.memory_space<vmem>>, vector<2x2x128xf32>
    %c0_3 = arith.constant 0 : index
    %c0_4 = arith.constant 0 : index
    %4 = vector.load %arg11[%c0_3, %c0_4] : memref<2x128xf32, #tpu.memory_space<vmem>>, vector<2x128xf32>
    %cst = arith.constant dense<0xFF800000> : vector<2x128xf32>
    %5 = vector.multi_reduction <maximumf>, %3, %cst [1] : vector<2x2x128xf32> to vector<2x128xf32>
    %6 = arith.maximumf %4, %5 : vector<2x128xf32>
    %c0_5 = arith.constant 0 : index
    %c0_6 = arith.constant 0 : index
    %7 = vector.load %arg11[%c0_5, %c0_6] : memref<2x128xf32, #tpu.memory_space<vmem>>, vector<2x128xf32>
    tpu.vector_store %arg11[%c0_5, %c0_6], %6 {strides = array<i32>} : memref<2x128xf32, #tpu.memory_space<vmem>>, vector<2x128xf32>,
    %c0_7 = arith.constant 0 : index
    %c0_8 = arith.constant 0 : index
    %8 = vector.load %arg12[%c0_7, %c0_8] : memref<2x128xf32, #tpu.memory_space<vmem>>, vector<2x128xf32>
    %cst_9 = arith.constant dense<0.000000e+00> : vector<2x128xf32>
    %9 = vector.multi_reduction <add>, %3, %cst_9 [1] : vector<2x2x128xf32> to vector<2x128xf32>
    %10 = arith.addf %8, %9 : vector<2x128xf32>
    %c0_10 = arith.constant 0 : index
    %c0_11 = arith.constant 0 : index
    %11 = vector.load %arg12[%c0_10, %c0_11] : memref<2x128xf32, #tpu.memory_space<vmem>>, vector<2x128xf32>
    tpu.vector_store %arg12[%c0_10, %c0_11], %10 {strides = array<i32>} : memref<2x128xf32, #tpu.memory_space<vmem>>, vector<2x128xf32>,
    %c0_i32_12 = arith.constant 0 : i32
    %12 = arith.cmpi eq, %arg1, %c0_i32_12 : i32
    %13 = arith.extui %12 : i1 to i32
    %c0_i32_13 = arith.constant 0 : i32
    %14 = arith.cmpi ne, %13, %c0_i32_13 : i32
    scf.if %14 {
      %c0_14 = arith.constant 0 : index
      %c0_15 = arith.constant 0 : index
      %15 = vector.load %arg11[%c0_14, %c0_15] : memref<2x128xf32, #tpu.memory_space<vmem>>, vector<2x128xf32>
      %16 = vector.extract_strided_slice %15 {offsets = [0, 0], sizes = [2, 32], strides = [1, 1]} : vector<2x128xf32> to vector<2x32xf32>
      %17 = vector.extract_strided_slice %15 {offsets = [0, 32], sizes = [2, 32], strides = [1, 1]} : vector<2x128xf32> to vector<2x32xf32>
      %18 = arith.maximumf %16, %17 : vector<2x32xf32>
      %19 = vector.extract_strided_slice %15 {offsets = [0, 64], sizes = [2, 32], strides = [1, 1]} : vector<2x128xf32> to vector<2x32xf32>
      %20 = arith.maximumf %18, %19 : vector<2x32xf32>
      %21 = vector.extract_strided_slice %15 {offsets = [0, 96], sizes = [2, 32], strides = [1, 1]} : vector<2x128xf32> to vector<2x32xf32>
      %22 = arith.maximumf %20, %21 : vector<2x32xf32>
      %c0_16 = arith.constant 0 : index
      %c0_17 = arith.constant 0 : index
      %23 = vector.load %arg3[%c0_16, %c0_17] : memref<32x32xf32, #tpu.memory_space<vmem>>, vector<32x32xf32>
      %cst_18 = arith.constant dense<0.000000e+00> : vector<2x32xf32>
      %24 = tpu.matmul %22, %23, %cst_18 {dimension_numbers = #tpu.dot_dimension_numbers<[1], [0], [0], [1], [0, 0, 1, 1], [], []>} : vector<2x32xf32>, vector<32x32xf32>, vector<2x32xf32> -> vector<2x32xf32>
      %c0_19 = arith.constant 0 : index
      %c0_20 = arith.constant 0 : index
      %25 = vector.load %arg12[%c0_19, %c0_20] : memref<2x128xf32, #tpu.memory_space<vmem>>, vector<2x128xf32>
      %c0_21 = arith.constant 0 : index
      %c0_22 = arith.constant 0 : index
      %26 = vector.load %arg4[%c0_21, %c0_22] : memref<128x32xf32, #tpu.memory_space<vmem>>, vector<128x32xf32>
      %cst_23 = arith.constant dense<0.000000e+00> : vector<2x32xf32>
      %27 = tpu.matmul %25, %26, %cst_23 {dimension_numbers = #tpu.dot_dimension_numbers<[1], [0], [0], [1], [0, 0, 1, 1], [], []>} : vector<2x128xf32>, vector<128x32xf32>, vector<2x32xf32> -> vector<2x32xf32>
      %28 = arith.addf %24, %27 : vector<2x32xf32>
      %c0_24 = arith.constant 0 : index
      %c0_25 = arith.constant 0 : index
      %29 = vector.load %arg5[%c0_24, %c0_25] : memref<1x32xf32, #tpu.memory_space<vmem>>, vector<1x32xf32>
      %30 = vector.broadcast %29 : vector<1x32xf32> to vector<2x32xf32>
      %31 = arith.addf %28, %30 : vector<2x32xf32>
      %cst_26 = arith.constant 0.000000e+00 : f32
      %32 = vector.broadcast %cst_26 : f32 to vector<2x32xf32>
      %33 = arith.maximumf %31, %32 : vector<2x32xf32>
      %c0_27 = arith.constant 0 : index
      %c0_28 = arith.constant 0 : index
      %34 = vector.load %arg6[%c0_27, %c0_28] : memref<32x32xf32, #tpu.memory_space<vmem>>, vector<32x32xf32>
      %cst_29 = arith.constant dense<0.000000e+00> : vector<2x32xf32>
      %35 = tpu.matmul %33, %34, %cst_29 {dimension_numbers = #tpu.dot_dimension_numbers<[1], [0], [0], [1], [0, 0, 1, 1], [], []>} : vector<2x32xf32>, vector<32x32xf32>, vector<2x32xf32> -> vector<2x32xf32>
      %c0_30 = arith.constant 0 : index
      %c0_31 = arith.constant 0 : index
      %36 = vector.load %arg7[%c0_30, %c0_31] : memref<1x32xf32, #tpu.memory_space<vmem>>, vector<1x32xf32>
      %37 = vector.broadcast %36 : vector<1x32xf32> to vector<2x32xf32>
      %38 = arith.addf %35, %37 : vector<2x32xf32>
      %cst_32 = arith.constant 0.000000e+00 : f32
      %39 = vector.broadcast %cst_32 : f32 to vector<2x32xf32>
      %40 = arith.maximumf %38, %39 : vector<2x32xf32>
      %c0_33 = arith.constant 0 : index
      %c0_34 = arith.constant 0 : index
      %41 = vector.load %arg8[%c0_33, %c0_34] : memref<32x128xf32, #tpu.memory_space<vmem>>, vector<32x128xf32>
      %cst_35 = arith.constant dense<0.000000e+00> : vector<2x128xf32>
      %42 = tpu.matmul %40, %41, %cst_35 {dimension_numbers = #tpu.dot_dimension_numbers<[1], [0], [0], [1], [0, 0, 1, 1], [], []>} : vector<2x32xf32>, vector<32x128xf32>, vector<2x128xf32> -> vector<2x128xf32>
      %c0_36 = arith.constant 0 : index
      %c0_37 = arith.constant 0 : index
      %43 = vector.load %arg9[%c0_36, %c0_37] : memref<1x128xf32, #tpu.memory_space<vmem>>, vector<1x128xf32>
      %44 = vector.broadcast %43 : vector<1x128xf32> to vector<2x128xf32>
      %45 = arith.addf %42, %44 : vector<2x128xf32>
      %c0_38 = arith.constant 0 : index
      %c0_39 = arith.constant 0 : index
      %46 = vector.load %arg10[%c0_38, %c0_39] : memref<2x128xf32, #tpu.memory_space<vmem>>, vector<2x128xf32>
      tpu.vector_store %arg10[%c0_38, %c0_39], %45 {strides = array<i32>} : memref<2x128xf32, #tpu.memory_space<vmem>>, vector<2x128xf32>,
    } else {
    }
    return
  }
  func.func @transform_0(%arg0: i32, %arg1: i32) -> (i32, i32, i32) {
    %c0_i32 = arith.constant 0 : i32
    %c0_i32_0 = arith.constant 0 : i32
    return %arg0, %arg1, %c0_i32 : i32, i32, i32
  }
  func.func @transform_1(%arg0: i32, %arg1: i32) -> (i32, i32) {
    %c0_i32 = arith.constant 0 : i32
    %c0_i32_0 = arith.constant 0 : i32
    %c0_i32_1 = arith.constant 0 : i32
    return %c0_i32, %c0_i32_0 : i32, i32
  }
  func.func @transform_2(%arg0: i32, %arg1: i32) -> (i32, i32) {
    %c0_i32 = arith.constant 0 : i32
    %c0_i32_0 = arith.constant 0 : i32
    %c0_i32_1 = arith.constant 0 : i32
    return %c0_i32, %c0_i32_0 : i32, i32
  }
  func.func @transform_3(%arg0: i32, %arg1: i32) -> (i32, i32) {
    %c0_i32 = arith.constant 0 : i32
    %c0_i32_0 = arith.constant 0 : i32
    %c0_i32_1 = arith.constant 0 : i32
    return %c0_i32, %c0_i32_0 : i32, i32
  }
  func.func @transform_4(%arg0: i32, %arg1: i32) -> (i32, i32) {
    %c0_i32 = arith.constant 0 : i32
    %c0_i32_0 = arith.constant 0 : i32
    %c0_i32_1 = arith.constant 0 : i32
    return %c0_i32, %c0_i32_0 : i32, i32
  }
  func.func @transform_5(%arg0: i32, %arg1: i32) -> (i32, i32) {
    %c0_i32 = arith.constant 0 : i32
    %c0_i32_0 = arith.constant 0 : i32
    %c0_i32_1 = arith.constant 0 : i32
    return %c0_i32, %c0_i32_0 : i32, i32
  }
  func.func @transform_6(%arg0: i32, %arg1: i32) -> (i32, i32) {
    %c0_i32 = arith.constant 0 : i32
    %c0_i32_0 = arith.constant 0 : i32
    %c0_i32_1 = arith.constant 0 : i32
    return %c0_i32, %c0_i32_0 : i32, i32
  }
  func.func @transform_7(%arg0: i32, %arg1: i32) -> (i32, i32) {
    %c0_i32 = arith.constant 0 : i32
    %c0_i32_0 = arith.constant 0 : i32
    %c0_i32_1 = arith.constant 0 : i32
    return %c0_i32, %c0_i32_0 : i32, i32
  }
  func.func @transform_8(%arg0: i32, %arg1: i32) -> (i32, i32) {
    %c0_i32 = arith.constant 0 : i32
    %c0_i32_0 = arith.constant 0 : i32
    return %arg0, %c0_i32 : i32, i32
  }
}

</mosaic_0001>

<bundles_post_ra>
// kernel: tpu_custom_call.1
= control target key start
LH: loop header
LB: loop body
LE: loop exit
PB: predicated region body
PF: predicated region fallthrough
CT: control target
= control target key end

     0   :  { %vm39_vm0 = vcmask 1041408   ;;  %v637_v2 = vmov -inf   ;;  %v638_v7 = vmov 0.0|0.0   ;;  %v639_v17 = vmov 0.0   ;;  %s833_s0 = inlined_call_operand.vmem [shape: f32[2,2,128], index: 0, kind: input, shape index: {}]   ;;  %s834_s1 = inlined_call_operand.vmem [shape: f32[32,32], index: 1, kind: input, shape index: {}]   ;;  %s835_s2 = inlined_call_operand.vmem [shape: f32[128,32], index: 2, kind: input, shape index: {}]   ;;  %s836_s3 = inlined_call_operand.vmem [shape: f32[1,32], index: 3, kind: input, shape index: {}]   ;;  %s837_s4 = inlined_call_operand.vmem [shape: f32[32,32], index: 4, kind: input, shape index: {}]   ;;  %s838_s5 = inlined_call_operand.vmem [shape: f32[1,32], index: 5, kind: input, shape index: {}]   ;;  %s839_s6 = inlined_call_operand.vmem [shape: f32[32,128], index: 6, kind: input, shape index: {}]   ;;  %s840_s7 = inlined_call_operand.vmem [shape: f32[1,128], index: 7, kind: input, shape index: {}]   ;;  %s841_s8 = inlined_call_operand.hbm [shape: f32[2,128], index: 8, kind: output, shape index: {}]  }
   0x1   :  { %v36_v0 = vld [vmem:[%s833_s0] sm:$0x3]  ;;  %v37_v1 = vld [vmem:[%s833_s0 + $0x2] sm:$0x3]  ;;  %34 = vst [vmem:[#allocation2] sm:$0x3] %v637_v2  ;;  %563 = vmatprep.subr.bf16.mxu0 %v638_v7  ;;  %587 = vmatprep.subr.bf16.mxu1 %v638_v7 }
   0x2   :  { %v40_v3 = vsel %vm39_vm0, %v36_v0, -inf  ;;  %v47_v4 = vsel %vm39_vm0, %v37_v1, -inf  ;;  %v104_v8 = vld [vmem:[%s835_s2] sm:$0xff]  ;;  %v105_v9 = vld [vmem:[%s835_s2 + $0x8] sm:$0xff]  ;;  %v106_v10 = vld [vmem:[%s835_s2 + $0x10] sm:$0xff]  ;;  %v62_v13 = vsel %vm39_vm0, %v36_v0, 0.0 }
   0x3   :  { %v41_v5 = vrot.slane %v40_v3, 4  ;;  %v48_v6 = vrot.slane %v47_v4, 4  ;;  %v564_v11 = vpack.c.bf16 %v105_v9, %v104_v8  ;;  %v107_v12 = vld [vmem:[%s835_s2 + $0x18] sm:$0xff]  ;;  %v69_v14 = vsel %vm39_vm0, %v37_v1, 0.0  ;;  %35 = vst [vmem:[#allocation3] sm:$0x3] %v639_v17 }
   0x4   :  { %v567_v18 = vpack.c.bf16 %v107_v12, %v106_v10  ;;  %v63_v19 = vrot.slane %v62_v13, 4  ;;  %v70_v20 = vrot.slane %v69_v14, 4  ;;  %v108_v23 = vld [vmem:[%s835_s2 + $0x20] sm:$0xff]  ;;  %v109_v24 = vld [vmem:[%s835_s2 + $0x28] sm:$0xff] }
   0x5   :  { %v42_v15 = vmax.f32 %v40_v3, %v41_v5  ;;  %v49_v16 = vmax.f32 %v47_v4, %v48_v6  ;;  %565 = vmatpush3.bf16.msra.mxu0 %v564_v11 }
   0x6   :  { %566 = vmatprep.subr.bf16.mxu0 %v638_v7 }
   0x7   :  { %v43_v21 = vrot.slane %v42_v15, 2  ;;  %v50_v22 = vrot.slane %v49_v16, 2 }
   0x8   :  { %13 = vsyncpa [#allocation5], 0  ;;  %v64_v25 = vadd.f32 %v63_v19, %v62_v13  ;;  %v71_v26 = vadd.f32 %v70_v20, %v69_v14  ;;  %v570_v29 = vpack.c.bf16 %v109_v24, %v108_v23  ;;  %v110_v30 = vld [vmem:[%s835_s2 + $0x30] sm:$0xff]  ;;  %v111_v35 = vld [vmem:[%s835_s2 + $0x38] sm:$0xff]  ;;  %vm56_vm1 = vcmask 1041409   ;;  %s641_s20 = smov 96  }
   0x9   :  { %v44_v27 = vmax.f32 %v42_v15, %v43_v21  ;;  %v51_v28 = vmax.f32 %v49_v16, %v50_v22  ;;  %568 = vmatpush3.bf16.msra.mxu0 %v567_v18  ;;  %v99_v36 = vld [vmem:[%s834_s1] sm:$0xff]  ;;  %v100_v37 = vld [vmem:[%s834_s1 + $0x8] sm:$0xff]  ;;  %v573_v44 = vpack.c.bf16 %v111_v35, %v110_v30  ;;  %v101_v50 = vld [vmem:[%s834_s1 + $0x10] sm:$0xff]  ;;  %vm640_vm2 = vmmov 0   ;;  %s642_s21 = smov 32   ;;  %s643_s26 = smov 64  }
   0xa   :  { %v65_v31 = vrot.slane %v64_v25, 2  ;;  %v72_v32 = vrot.slane %v71_v26, 2  ;;  %569 = vmatprep.subr.bf16.mxu0 %v638_v7  ;;  %v588_v38 = vpack.c.bf16 %v100_v37, %v99_v36  ;;  %v38_v41 = vld [vmem:[#allocation2] sm:$0x3]  ;;  %v113_v49 = vld [vmem:[%s835_s2 + $0x48] sm:$0xff]  ;;  %v102_v51 = vld [vmem:[%s834_s1 + $0x18] sm:$0xff]  ;;  %527 = vmatprep.mubr.msk.f32.mxu0 %vm640_vm2, %v639_v17 }
   0xb   :  { %v45_v33 = vrot.slane %v44_v27, 1  ;;  %v52_v34 = vrot.slane %v51_v28, 1  ;;  %v112_v45 = vld [vmem:[%s835_s2 + $0x40] sm:$0xff]  ;;  %v591_v53 = vpack.c.bf16 %v102_v51, %v101_v50  ;;  %v114_v60 = vld [vmem:[%s835_s2 + $0x50] sm:$0xff]  ;;  %v115_v61 = vld [vmem:[%s835_s2 + $0x58] sm:$0xff]  ;;  %538 = vmatprep.mubr.msk.f32.mxu1 %vm640_vm2, %v639_v17  ;;  %vm190_vm3 = vcmask 261120  }
   0xc   :  { %v66_v39 = vadd.f32 %v65_v31, %v64_v25  ;;  %v73_v40 = vadd.f32 %v72_v32, %v71_v26  ;;  %589 = vmatpush3.bf16.msra.mxu1 %v588_v38  ;;  %v61_v54 = vld [vmem:[#allocation3] sm:$0x3]  ;;  %v576_v57 = vpack.c.bf16 %v113_v49, %v112_v45  ;;  %v579_v62 = vpack.c.bf16 %v115_v61, %v114_v60  ;;  %v117_v0 = vld [vmem:[%s835_s2 + $0x68] sm:$0xff]  ;;  %v118_v3 = vld [vmem:[%s835_s2 + $0x70] sm:$0xff]  ;;  %s644_s22 = smov [#allocation4]  }
   0xd   :  { %v46_v42 = vmax.f32 %v44_v27, %v45_v33  ;;  %v53_v43 = vmax.f32 %v51_v28, %v52_v34  ;;  %571 = vmatpush3.bf16.msra.mxu0 %v570_v29  ;;  %590 = vmatprep.subr.bf16.mxu1 %v638_v7  ;;  %v116_v63 = vld [vmem:[%s835_s2 + $0x60] sm:$0xff]  ;;  %v119_v4 = vld [vmem:[%s835_s2 + $0x78] sm:$0xff]  ;;  %v274_v15 = vld [vmem:[%s837_s4 + $0x8] sm:$0xff]  ;;  %s449_s23 = sshll.u32 %s644_s22, 4  ;;  %s450_s23 = int_to_ptr.vmem [resolvable:$true] %s449_s23 }
   0xe   :  { %v67_v46 = vrot.slane %v66_v39, 1  ;;  %v74_v47 = vrot.slane %v73_v40, 1  ;;  %572 = vmatprep.subr.bf16.mxu0 %v638_v7  ;;  %v582_v2 = vpack.c.bf16 %v117_v0, %v116_v63  ;;  %v585_v5 = vpack.c.bf16 %v119_v4, %v118_v3  ;;  %v273_v14 = vld [vmem:[%s837_s4] sm:$0xff]  ;;  %v275_v18 = vld [vmem:[%s837_s4 + $0x10] sm:$0xff]  ;;  %v276_v19 = vld [vmem:[%s837_s4 + $0x18] sm:$0xff]  ;;  %p618_p1 = scmp.lt.s32.totalorder %s450_s23, %s450_s23 }
   0xf   :  { %v57_v48 = vsel %vm56_vm1, %v53_v43, %v46_v42  ;;  %v594_v16 = vpack.c.bf16 %v274_v15, %v273_v14  ;;  %v597_v20 = vpack.c.bf16 %v276_v19, %v275_v18  ;;  %v458_v24 = vld [vmem:[%s836_s3] ss:$0 sm:$0xff]  ;;  %v359_v28 = vld [vmem:[%s839_s6 + $0x8] sm:$0xff]  ;;  %v360_v32 = vld [vmem:[%s839_s6 + $0x10] sm:$0xff] }
  0x10   :  { %v59_v52 = vmax.f32 %v38_v41, %v57_v48  ;;  %v68_v55 = vadd.f32 %v67_v46, %v66_v39  ;;  %v75_v56 = vadd.f32 %v74_v47, %v73_v40  ;;  %592 = vmatpush3.bf16.msra.mxu1 %v591_v53  ;;  %v358_v27 = vld [vmem:[%s839_s6] sm:$0xff]  ;;  %v361_v33 = vld [vmem:[%s839_s6 + $0x18] sm:$0xff]  ;;  %s613_s6 = scalar_lea.vmem %s450_s23, 32 }
  0x11   :  { %574 = vmatpush3.bf16.msra.mxu0 %v573_v44  ;;  %593 = vmatprep.subr.bf16.mxu1 %v638_v7  ;;  %v600_v30 = vpack.c.bf16 %v359_v28, %v358_v27  ;;  %v603_v34 = vpack.c.bf16 %v361_v33, %v360_v32  ;;  %v459_v35 = vld [vmem:[%s838_s5] ss:$0 sm:$0xff]  ;;  %p614_p0 = scmp.ne.s32.totalorder %s450_s23, %s613_s6  ;;  %p619_p2 = scmp.lt.s32.totalorder %s613_s6, %s613_s6 }
  0x12   :  { %60 = vst [vmem:[#allocation2] sm:$0x3] %v59_v52  ;;  %v78_v58 = vsel %vm56_vm1, %v75_v56, %v68_v55  ;;  %575 = vmatprep.subr.bf16.mxu0 %v638_v7 }
  0x13   :  { %v80_v59 = vadd.f32 %v78_v58, %v61_v54  ;;  %p620_p3 = por %p619_p2, %p618_p1 }
  0x15   :  { %81 = vst [vmem:[#allocation3] sm:$0x3] %v80_v59  ;;  %577 = vmatpush3.bf16.msra.mxu0 %v576_v57  ;;  %p621_p4 = pnand %p620_p3, %p614_p0 }
  0x16   :  { %578 = vmatprep.subr.bf16.mxu0 %v638_v7 }
  0x19   :  { %v85_v1 = vld [vmem:[#allocation2] sm:$0x3]  ;;  %580 = vmatpush3.bf16.msra.mxu0 %v579_v62 }
  0x1a   :  { %87 = vrot.lane.b32.xlu0 %v85_v1, %s641_s20  ;;  %95 = vrot.lane.b32.xlu1 %v85_v1, %s642_s21 }
  0x1b   :  { %581 = vmatprep.subr.bf16.mxu0 %v638_v7 }
  0x1c   :  { %v103_v6 = vld [vmem:[#allocation3] sm:$0x3] }
  0x1d   :  { %583 = vmatpush3.bf16.msra.mxu0 %v582_v2 }
  0x1e   :  { %91 = vrot.lane.b32.xlu0 %v85_v1, %s643_s26  ;;  %584 = vmatprep.subr.bf16.mxu0 %v638_v7 }
  0x21   :  { %586 = vmatpush3.bf16.msra.mxu0 %v585_v5 }
  0x24   :  { %528 = vmatmul.mubr.f32.vlgmr.msra.gmra.mrb[0].mxu0 %v103_v6 }
  0x8c   :  { %v88_v8 = vpop.permute.xlu0 %87  ;;  %v96_v11 = vpop.permute.xlu1 %95 }
  0x8d   :  { %v90_v9 = vmax.f32 %v85_v1, %v88_v8 }
  0x90   :  { %v92_v10 = vpop.permute.xlu0 %91 }
  0x91   :  { %v94_v12 = vmax.f32 %v90_v9, %v92_v10 }
  0x93   :  { %v98_v13 = vmax.f32 %v94_v12, %v96_v11 }
  0x95   :  { %539 = vmatmul.mubr.msk.f32.vlgmr.msra.gmra.mrb[0].mxu1 %vm190_vm3, %v98_v13 }
  0x96   :  { %549 = vmatprep.mubr.msk.f32.mxu1 %vm640_vm2, %v639_v17  ;;  %595 = vmatpush3.bf16.msra.mxu1 %v594_v16 }
  0x97   :  { %596 = vmatprep.subr.bf16.mxu1 %v638_v7 }
  0x9a   :  { %598 = vmatpush3.bf16.msra.mxu1 %v597_v20 }
  0x9b   :  { %599 = vmatprep.subr.bf16.mxu1 %v638_v7 }
  0xf7   :  { %v186_v21 = vpop.f32.mrb[0].mxu0 }
  0xf8   :  { %v529_v22 = vpop.f32.mrb[1].mxu0 }
 0x168   :  { %v260_v23 = vpop.f32.mrb[0].mxu1 }
 0x169   :  { %v261_v25 = vadd.f32 %v260_v23, %v186_v21  ;;  %v540_v26 = vpop.f32.mrb[1].mxu1 }
 0x16b   :  { %v271_v29 = vadd.f32 %v458_v24, %v261_v25 }
 0x16d   :  { %v272_v31 = vmax.f32 %v271_v29, 0.0 }
 0x16f   :  { %550 = vmatmul.mubr.msk.f32.vlgmr.msra.gmra.mrb[2].mxu1 %vm190_vm3, %v272_v31 }
 0x170   :  { %601 = vmatpush3.bf16.msra.mxu1 %v600_v30  ;;  %560 = vmatprep.mubr.msk.f32.mxu1 %vm640_vm2, %v639_v17 }
 0x171   :  { %602 = vmatprep.subr.bf16.mxu1 %v638_v7  ;;  %v461_v7 = vld [vmem:[%s840_s7] ss:$0 sm:$0xff] }
 0x174   :  { %604 = vmatpush3.bf16.msra.mxu1 %v603_v34 }
 0x242   :  { %v353_v36 = vpop.f32.mrb[2].mxu1 }
 0x243   :  { %v354_v37 = vadd.f32 %v459_v35, %v353_v36  ;;  %v551_v38 = vpop.f32.mrb[3].mxu1 }
 0x245   :  { %v357_v17 = vmax.f32 %v354_v37, 0.0 }
 0x247   :  { %561 = vmatmul.mubr.msk.f32.vlgmr.msra.gmra.mrb[4].mxu1 %vm190_vm3, %v357_v17 }
 0x31a   :  { %v438_v39 = vpop.f32.mrb[4].mxu1 }
 0x31b   :  { %v439_v40 = vadd.f32 %v461_v7, %v438_v39  ;;  %v562_v41 = vpop.f32.mrb[5].mxu1 }
 0x31d   :  { %442 = vst [vmem:[#allocation4] sm:$0x3] %v439_v40 }
 0x31e   :  { %624 = shalt.err (!%p621_p4)
}
 0x31f   :  { %s625_s25 = scalar_lea.hbm %s841_s8, 32 }
 0x320   :  { %p626_p5 = scmp.ne.s32.totalorder %s841_s8, %s625_s25  ;;  %p629_p6 = scmp.lt.u32.totalorder %s625_s25, %s841_s8 }
 0x322   :  { %p631_p7 = pnand %p629_p6, %p626_p5 }
 0x324   :  { %634 = shalt.err (!%p631_p7)
}
 0x325   :  { %452 = dma.vmem_to_hbm [thread:$0]  %s450_s23, 32, %s841_s8, [#allocation5]  }
 0x326   :  { %635 = dma.done.wait [#allocation5], 32  }
 0x327   :  { %636 = vsyncadd [#allocation5], 4294967264 }
 0x328   :  { %456 = vsyncpa [#allocation5], 1 }

</bundles_post_ra>
